<compile_context>
chip_gen: v6e
topology: v6e:2x2x1
jax: 0.10.0
libtpu: 0.0.40
codegen_flags: <defaults>
</compile_context>

<pallas_src>
import jax
import jax.numpy as jnp
from jax.experimental import pallas as pl
from jax.experimental.pallas import tpu as pltpu

_HEAD_ORDER = ("y1", "y0", "ctr")          # output column order
_TABLE_VMEM_BUDGET = 24 * 1024 * 1024      # bf16 tables up to this stay VMEM-resident
_GATHER_FUSION_OK = None                   # lazily probed: can Mosaic lower the row gather?


def _round_up(x, m):
    return ((x + m - 1) // m) * m


# --------------------------------------------------------------------------- kernels

def _pregathered_kernel(z_ref, w1_ref, b1_ref, w2_ref, out_ref):
    """Fused 3-head MLP on a pre-gathered (TB, 2K) bf16 tile (single 2K-deep dot)."""
    h = jnp.dot(z_ref[...], w1_ref[...], preferred_element_type=jnp.float32)
    h = jnp.maximum(h + b1_ref[...], 0.0)                       # bias + ReLU in f32
    # bf16 x bf16 second projection, f32 accumulation: avoids multi-pass f32 MXU work.
    out_ref[...] = jnp.dot(h.astype(jnp.bfloat16), w2_ref[...],
                           preferred_element_type=jnp.float32)


def _gather_fused_kernel(idx_ref, utab_ref, itab_ref, w1_ref, b1_ref, w2_ref, out_ref):
    """In-kernel embedding gather from VMEM-resident tables + fused 3-head MLP.

    idx_ref : (TB, 2) int32  [user_idx, item_idx] rows of this batch tile
    utab_ref: (U, K)  bf16   user embedding table   (VMEM-resident, constant block)
    itab_ref: (I, K)  bf16   item embedding table   (VMEM-resident, constant block)
    w1_ref  : (2K, H) bf16   fused first-layer weights (rows = [user dims | item dims])
    b1_ref  : (1, H)  f32    fused first-layer bias
    w2_ref  : (H, 3)  bf16   block-diagonal fused second-layer weights
    out_ref : (TB, 3) f32    columns = [y1, y0, ctr]
    """
    tb = idx_ref.shape[0]
    k = utab_ref.shape[1]
    in_bounds = jax.lax.GatherScatterMode.PROMISE_IN_BOUNDS
    uidx = jnp.broadcast_to(idx_ref[:, 0:1], (tb, k))
    iidx = jnp.broadcast_to(idx_ref[:, 1:2], (tb, k))
    u = jnp.take_along_axis(utab_ref[...], uidx, axis=0, mode=in_bounds)   # (TB, K) bf16
    it = jnp.take_along_axis(itab_ref[...], iidx, axis=0, mode=in_bounds)  # (TB, K) bf16
    h = jnp.dot(u, w1_ref[:k, :], preferred_element_type=jnp.float32)
    h = h + jnp.dot(it, w1_ref[k:, :], preferred_element_type=jnp.float32)
    h = jnp.maximum(h + b1_ref[...], 0.0)
    out_ref[...] = jnp.dot(h.astype(jnp.bfloat16), w2_ref[...],
                           preferred_element_type=jnp.float32)


# --------------------------------------------------------------------------- packing

def pack_params(params):
    """One-time packing: fuse the three heads, pad the head dim to full lanes, pre-cast."""
    K = params["user_embedding"].shape[1]
    H = _round_up(3 * K, 128)                 # fused hidden dim, padded to a lane multiple

    w1 = jnp.zeros((2 * K, H), jnp.float32)   # rows: [user dims | item dims]
    b1 = jnp.zeros((1, H), jnp.float32)
    w2 = jnp.zeros((H, 3), jnp.float32)       # block diagonal: column j <- head j
    for j, name in enumerate(_HEAD_ORDER):
        # PyTorch Linear stores weight as (out, in); transpose to (in, out).
        w1 = w1.at[:, j * K:(j + 1) * K].set(params[f"{name}_w1"].T.astype(jnp.float32))
        b1 = b1.at[0, j * K:(j + 1) * K].set(params[f"{name}_b1"].astype(jnp.float32))
        w2 = w2.at[j * K:(j + 1) * K, j].set(
            params[f"{name}_w2"].reshape(K).astype(jnp.float32))

    return {
        "user_embedding": params["user_embedding"].astype(jnp.bfloat16),
        "item_embedding": params["item_embedding"].astype(jnp.bfloat16),
        "w1": w1.astype(jnp.bfloat16),
        "b1": b1,                              # bias stays f32 (added to the f32 accumulator)
        "w2": w2.astype(jnp.bfloat16),
        "embedding_k": K,
        "hidden": H,
    }


# --------------------------------------------------------------------------- tiling

def _choose_tiling(B, K, tile_bytes):
    """K-aware batch tile: ~tile_bytes of (TB, 2K) bf16 per tile, 16-row aligned,
    with an even tile count (when possible) so both v7x TensorCores get work."""
    row_bytes = 2 * K * 2
    tb = max(16, min(32768, tile_bytes // row_bytes))
    tb = min(_round_up(tb, 16), _round_up(B, 16))
    n = pl.cdiv(B, tb)
    if n > 1 and n % 2 == 1:                  # prefer an even number of batch tiles
        n += 1
        tb = _round_up(pl.cdiv(B, n), 16)
        n = pl.cdiv(B, tb)
    return tb, n, tb * n                      # (TB, num_tiles, padded batch)


def _vmem_limit_bytes(TB, K, H, tables_bytes):
    """Explicit scoped-VMEM request: double-buffered streams + resident weights +
    in-kernel intermediates with headroom; capped well under v7x's 64 MiB."""
    streams = 2 * TB * (2 * K) * 2 + 2 * TB * 2 * 4 + 2 * TB * 3 * 4
    weights = 2 * ((2 * K) * H * 2 + H * 4 + H * 3 * 2) + 2 * tables_bytes
    interm = TB * H * 4 + 4 * TB * K * 2      # f32 hidden + gathered/streamed bf16 tiles
    need = int(1.25 * (streams + weights + interm))
    return int(min(48 * 1024 * 1024, max(32 * 1024 * 1024, need)))


# --------------------------------------------------------------------------- forward

def _forward_fused(x_pad, packed, TB, n_tiles):
    K, H = packed["embedding_k"], packed["hidden"]
    utab, itab = packed["user_embedding"], packed["item_embedding"]
    B_pad = x_pad.shape[0]
    tables_bytes = (utab.size + itab.size) * 2
    return pl.pallas_call(
        _gather_fused_kernel,
        out_shape=jax.ShapeDtypeStruct((B_pad, 3), jnp.float32),
        grid=(n_tiles,),
        in_specs=[
            pl.BlockSpec((TB, 2), lambda i: (i, 0)),       # index tile (per-step HBM read)
            pl.BlockSpec(utab.shape, lambda i: (0, 0)),    # user table, VMEM-resident
            pl.BlockSpec(itab.shape, lambda i: (0, 0)),    # item table, VMEM-resident
            pl.BlockSpec((2 * K, H), lambda i: (0, 0)),    # fused W1, VMEM-resident
            pl.BlockSpec((1, H), lambda i: (0, 0)),        # fused bias
            pl.BlockSpec((H, 3), lambda i: (0, 0)),        # block-diagonal W2
        ],
        out_specs=pl.BlockSpec((TB, 3), lambda i: (i, 0)),
        compiler_params=pltpu.CompilerParams(
            dimension_semantics=("parallel",),
            vmem_limit_bytes=_vmem_limit_bytes(TB, K, H, tables_bytes),
        ),
    )(x_pad, utab, itab, packed["w1"], packed["b1"], packed["w2"])


def _forward_pregather(x_pad, packed, TB, n_tiles):
    K, H = packed["embedding_k"], packed["hidden"]
    B_pad = x_pad.shape[0]
    # XLA fuses the two gathers + concat into one fusion emitting the (B_pad, 2K) bf16
    # stream the kernel consumes; in-kernel it is a single 2K-deep dot.
    u = jnp.take(packed["user_embedding"], x_pad[:, 0], axis=0)
    it = jnp.take(packed["item_embedding"], x_pad[:, 1], axis=0)
    z = jnp.concatenate([u, it], axis=1)                    # (B_pad, 2K) bf16
    return pl.pallas_call(
        _pregathered_kernel,
        out_shape=jax.ShapeDtypeStruct((B_pad, 3), jnp.float32),
        grid=(n_tiles,),
        in_specs=[
            pl.BlockSpec((TB, 2 * K), lambda i: (i, 0)),
            # Constant-index weight blocks stay VMEM-resident across the batch loop
            # (small enough that default double-buffering costs negligible VMEM).
            pl.BlockSpec((2 * K, H), lambda i: (0, 0)),
            pl.BlockSpec((1, H), lambda i: (0, 0)),
            pl.BlockSpec((H, 3), lambda i: (0, 0)),
        ],
        out_specs=pl.BlockSpec((TB, 3), lambda i: (i, 0)),
        compiler_params=pltpu.CompilerParams(
            dimension_semantics=("parallel",),
            vmem_limit_bytes=_vmem_limit_bytes(TB, K, H, 0),
        ),
    )(z, packed["w1"], packed["b1"], packed["w2"])


def shared_ncf_plus_forward(x, packed, *, tile_bytes=2 * 1024 * 1024):
    """x: int32 (B, 2) columns [user_idx, item_idx]. Returns (y1, y0, ctr), each (B, 1) f32."""
    global _GATHER_FUSION_OK
    B = x.shape[0]
    K = packed["embedding_k"]
    TB, n_tiles, B_pad = _choose_tiling(B, K, tile_bytes)
    # Pad the cheap (B, 2) index array (not the gathered activations) so the grid is exact.
    x_pad = x if B_pad == B else jnp.pad(x, ((0, B_pad - B), (0, 0)))

    tables_bytes = (packed["user_embedding"].size + packed["item_embedding"].size) * 2
    out = None
    if tables_bytes <= _TABLE_VMEM_BUDGET and _GATHER_FUSION_OK is not False:
        # TODO(synk): for tables too large for VMEM, a per-row make_async_copy DMA gather
        # (worth it for K >= ~256 bf16) would replace this path; here we fall back to an
        # XLA gather feeding the same fused MLP kernel if Mosaic can't lower the gather.
        try:
            fused = _forward_fused(x_pad, packed, TB, n_tiles)
            if _GATHER_FUSION_OK is None:
                jax.block_until_ready(fused)     # probe once: surface lowering/runtime errors
            _GATHER_FUSION_OK = True
            out = fused
        except Exception:
            _GATHER_FUSION_OK = False
    if out is None:
        out = _forward_pregather(x_pad, packed, TB, n_tiles)

    out = out[:B]
    return out[:, 0:1], out[:, 1:2], out[:, 2:3]             # (y1, y0, ctr)


# --------------------------------------------------------------------------- reference

def init_params(key, num_users, num_items, embedding_k):
    """Deterministic synthetic parameters matching the module's shapes."""
    ks = jax.random.split(key, 11)
    K = embedding_k
    p = {
        "user_embedding": jax.random.normal(ks[0], (num_users, K), jnp.float32) * 0.1,
        "item_embedding": jax.random.normal(ks[1], (num_items, K), jnp.float32) * 0.1,
    }
    idx = 2
    for name in ("ctr", "y1", "y0"):
        p[f"{name}_w1"] = jax.random.normal(ks[idx], (K, 2 * K), jnp.float32) * 0.1
        p[f"{name}_b1"] = jax.random.normal(ks[idx + 1], (K,), jnp.float32) * 0.1
        p[f"{name}_w2"] = jax.random.normal(ks[idx + 2], (1, K), jnp.float32) * 0.1
        idx += 3
    return p


def _reference_forward(x, params):
    """Pure-JAX f32 reference for correctness checking."""
    user_embed = jnp.take(params["user_embedding"], x[:, 0], axis=0)
    item_embed = jnp.take(params["item_embedding"], x[:, 1], axis=0)
    z = jnp.concatenate([user_embed, item_embed], axis=1)

    def head(name):
        h = jnp.maximum(z @ params[f"{name}_w1"].T + params[f"{name}_b1"], 0.0)
        return h @ params[f"{name}_w2"].T

    return head("y1"), head("y0"), head("ctr")


# --------------------------------------------------------------------------- demo

if __name__ == "__main__":
    num_users, num_items, embedding_k = 10, 12, 32
    key = jax.random.PRNGKey(0)
    pkey, ukey, ikey, u2key, i2key = jax.random.split(key, 5)
    params = init_params(pkey, num_users, num_items, embedding_k)
    packed = pack_params(params)       # one-time fuse / pad / cast, outside the fwd path

    def make_batch(b, uk, ik):
        ui = jax.random.randint(uk, (b,), 0, num_users, dtype=jnp.int32)
        ii = jax.random.randint(ik, (b,), 0, num_items, dtype=jnp.int32)
        return jnp.stack([ui, ii], axis=1)

    tol = dict(atol=1e-2, rtol=2e-2)   # bf16 operands, f32 accumulation

    # Small batch: single tile.
    x = make_batch(8, ukey, ikey)
    y1, y0, ctr = shared_ncf_plus_forward(x, packed)
    jax.block_until_ready((y1, y0, ctr))
    r1, r0, rc = _reference_forward(x, params)
    assert y1.shape == (8, 1) and y0.shape == (8, 1) and ctr.shape == (8, 1)
    assert jnp.allclose(y1, r1, **tol)
    assert jnp.allclose(y0, r0, **tol)
    assert jnp.allclose(ctr, rc, **tol)

    # Ragged batch with a forced small tile: exercises index padding, the multi-tile
    # grid and the even-tile-count megacore split.
    x2 = make_batch(300, u2key, i2key)
    y1, y0, ctr = shared_ncf_plus_forward(x2, packed, tile_bytes=4096)
    jax.block_until_ready((y1, y0, ctr))
    r1, r0, rc = _reference_forward(x2, params)
    assert y1.shape == (300, 1) and y0.shape == (300, 1) and ctr.shape == (300, 1)
    assert jnp.allclose(y1, r1, **tol)
    assert jnp.allclose(y0, r0, **tol)
    assert jnp.allclose(ctr, rc, **tol)

    print("KERNEL_OK")
</pallas_src>

<mosaic_0001>
module attributes {stable_mosaic.version = 11 : i64} {
  func.func @_gather_fused_kernel(%arg0: i32, %arg1: memref<16x2xi32, #tpu.memory_space<vmem>>, %arg2: memref<10x32xbf16, #tpu.memory_space<vmem>>, %arg3: memref<12x32xbf16, #tpu.memory_space<vmem>>, %arg4: memref<64x128xbf16, #tpu.memory_space<vmem>>, %arg5: memref<1x128xf32, #tpu.memory_space<vmem>>, %arg6: memref<128x3xbf16, #tpu.memory_space<vmem>>, %arg7: memref<16x3xf32, #tpu.memory_space<vmem>>) attributes {dimension_semantics = [#tpu.dimension_semantics<parallel>], iteration_bounds = array<i64: 1>, scalar_prefetch = 0 : i64, scratch_operands = 0 : i64, tpu.core_type = #tpu.core_type<tc>, window_params = [{transform_indices = @transform_0, window_bounds = array<i64: 16, 2>}, {pipeline_mode = #tpu.pipeline_mode<synchronous>, transform_indices = @transform_1, window_bounds = array<i64: 10, 32>}, {pipeline_mode = #tpu.pipeline_mode<synchronous>, transform_indices = @transform_2, window_bounds = array<i64: 12, 32>}, {pipeline_mode = #tpu.pipeline_mode<synchronous>, transform_indices = @transform_3, window_bounds = array<i64: 64, 128>}, {pipeline_mode = #tpu.pipeline_mode<synchronous>, transform_indices = @transform_4, window_bounds = array<i64: 1, 128>}, {pipeline_mode = #tpu.pipeline_mode<synchronous>, transform_indices = @transform_5, window_bounds = array<i64: 128, 3>}, {transform_indices = @transform_6, window_bounds = array<i64: 16, 3>}]} {
    %c0 = arith.constant 0 : index
    %c0_0 = arith.constant 0 : index
    %0 = vector.load %arg1[%c0, %c0_0] : memref<16x2xi32, #tpu.memory_space<vmem>>, vector<16x1xi32>
    %1 = vector.shape_cast %0 : vector<16x1xi32> to vector<16x1xi32>
    %2 = vector.broadcast %1 : vector<16x1xi32> to vector<16x32xi32>
    %c0_1 = arith.constant 0 : index
    %c1 = arith.constant 1 : index
    %3 = vector.load %arg1[%c0_1, %c1] : memref<16x2xi32, #tpu.memory_space<vmem>>, vector<16x1xi32>
    %4 = vector.shape_cast %3 : vector<16x1xi32> to vector<16x1xi32>
    %5 = vector.broadcast %4 : vector<16x1xi32> to vector<16x32xi32>
    %c0_2 = arith.constant 0 : index
    %c0_3 = arith.constant 0 : index
    %6 = vector.load %arg2[%c0_2, %c0_3] : memref<10x32xbf16, #tpu.memory_space<vmem>>, vector<10x32xbf16>
    %c0_i32 = arith.constant 0 : i32
    %7 = vector.broadcast %c0_i32 : i32 to vector<16x32xi32>
    %8 = arith.cmpi slt, %2, %7 : vector<16x32xi32>
    %c10_i32 = arith.constant 10 : i32
    %9 = vector.broadcast %c10_i32 : i32 to vector<16x32xi32>
    %10 = arith.addi %2, %9 : vector<16x32xi32>
    %11 = arith.select %8, %10, %2 : vector<16x32xi1>, vector<16x32xi32>
    %12 = vector.shape_cast %11 : vector<16x32xi32> to vector<16x32x1xi32>
    %13 = vector.shape_cast %12 : vector<16x32x1xi32> to vector<16x32xi32>
    %14 = tpu.dynamic_gather %6[%13] in [0] : vector<10x32xbf16>, vector<16x32xi32> -> vector<16x32xbf16>
    %c0_4 = arith.constant 0 : index
    %c0_5 = arith.constant 0 : index
    %15 = vector.load %arg3[%c0_4, %c0_5] : memref<12x32xbf16, #tpu.memory_space<vmem>>, vector<12x32xbf16>
    %c0_i32_6 = arith.constant 0 : i32
    %16 = vector.broadcast %c0_i32_6 : i32 to vector<16x32xi32>
    %17 = arith.cmpi slt, %5, %16 : vector<16x32xi32>
    %c12_i32 = arith.constant 12 : i32
    %18 = vector.broadcast %c12_i32 : i32 to vector<16x32xi32>
    %19 = arith.addi %5, %18 : vector<16x32xi32>
    %20 = arith.select %17, %19, %5 : vector<16x32xi1>, vector<16x32xi32>
    %21 = vector.shape_cast %20 : vector<16x32xi32> to vector<16x32x1xi32>
    %22 = vector.shape_cast %21 : vector<16x32x1xi32> to vector<16x32xi32>
    %23 = tpu.dynamic_gather %15[%22] in [0] : vector<12x32xbf16>, vector<16x32xi32> -> vector<16x32xbf16>
    %c0_7 = arith.constant 0 : index
    %c0_8 = arith.constant 0 : index
    %24 = vector.load %arg4[%c0_7, %c0_8] : memref<64x128xbf16, #tpu.memory_space<vmem>>, vector<32x128xbf16>
    %cst = arith.constant dense<0.000000e+00> : vector<16x128xf32>
    %25 = tpu.matmul %14, %24, %cst {dimension_numbers = #tpu.dot_dimension_numbers<[1], [0], [0], [1], [0, 0, 1, 1], [], []>} : vector<16x32xbf16>, vector<32x128xbf16>, vector<16x128xf32> -> vector<16x128xf32>
    %c32 = arith.constant 32 : index
    %c0_9 = arith.constant 0 : index
    %26 = vector.load %arg4[%c32, %c0_9] : memref<64x128xbf16, #tpu.memory_space<vmem>>, vector<32x128xbf16>
    %cst_10 = arith.constant dense<0.000000e+00> : vector<16x128xf32>
    %27 = tpu.matmul %23, %26, %cst_10 {dimension_numbers = #tpu.dot_dimension_numbers<[1], [0], [0], [1], [0, 0, 1, 1], [], []>} : vector<16x32xbf16>, vector<32x128xbf16>, vector<16x128xf32> -> vector<16x128xf32>
    %28 = arith.addf %25, %27 : vector<16x128xf32>
    %c0_11 = arith.constant 0 : index
    %c0_12 = arith.constant 0 : index
    %29 = vector.load %arg5[%c0_11, %c0_12] : memref<1x128xf32, #tpu.memory_space<vmem>>, vector<1x128xf32>
    %30 = vector.broadcast %29 : vector<1x128xf32> to vector<16x128xf32>
    %31 = arith.addf %28, %30 : vector<16x128xf32>
    %cst_13 = arith.constant 0.000000e+00 : f32
    %32 = vector.broadcast %cst_13 : f32 to vector<16x128xf32>
    %33 = arith.maximumf %31, %32 : vector<16x128xf32>
    %34 = arith.truncf %33 : vector<16x128xf32> to vector<16x128xbf16>
    %c0_14 = arith.constant 0 : index
    %c0_15 = arith.constant 0 : index
    %35 = vector.load %arg6[%c0_14, %c0_15] : memref<128x3xbf16, #tpu.memory_space<vmem>>, vector<128x3xbf16>
    %cst_16 = arith.constant dense<0.000000e+00> : vector<16x3xf32>
    %36 = tpu.matmul %34, %35, %cst_16 {dimension_numbers = #tpu.dot_dimension_numbers<[1], [0], [0], [1], [0, 0, 1, 1], [], []>} : vector<16x128xbf16>, vector<128x3xbf16>, vector<16x3xf32> -> vector<16x3xf32>
    %c0_17 = arith.constant 0 : index
    %c0_18 = arith.constant 0 : index
    %37 = vector.load %arg7[%c0_17, %c0_18] : memref<16x3xf32, #tpu.memory_space<vmem>>, vector<16x3xf32>
    tpu.vector_store %arg7[%c0_17, %c0_18], %36 {strides = array<i32>} : memref<16x3xf32, #tpu.memory_space<vmem>>, vector<16x3xf32>,
    return
  }
  func.func @transform_0(%arg0: i32) -> (i32, i32) {
    %c0_i32 = arith.constant 0 : i32
    %c0_i32_0 = arith.constant 0 : i32
    return %arg0, %c0_i32 : i32, i32
  }
  func.func @transform_1(%arg0: i32) -> (i32, i32) {
    %c0_i32 = arith.constant 0 : i32
    %c0_i32_0 = arith.constant 0 : i32
    %c0_i32_1 = arith.constant 0 : i32
    return %c0_i32, %c0_i32_0 : i32, i32
  }
  func.func @transform_2(%arg0: i32) -> (i32, i32) {
    %c0_i32 = arith.constant 0 : i32
    %c0_i32_0 = arith.constant 0 : i32
    %c0_i32_1 = arith.constant 0 : i32
    return %c0_i32, %c0_i32_0 : i32, i32
  }
  func.func @transform_3(%arg0: i32) -> (i32, i32) {
    %c0_i32 = arith.constant 0 : i32
    %c0_i32_0 = arith.constant 0 : i32
    %c0_i32_1 = arith.constant 0 : i32
    return %c0_i32, %c0_i32_0 : i32, i32
  }
  func.func @transform_4(%arg0: i32) -> (i32, i32) {
    %c0_i32 = arith.constant 0 : i32
    %c0_i32_0 = arith.constant 0 : i32
    %c0_i32_1 = arith.constant 0 : i32
    return %c0_i32, %c0_i32_0 : i32, i32
  }
  func.func @transform_5(%arg0: i32) -> (i32, i32) {
    %c0_i32 = arith.constant 0 : i32
    %c0_i32_0 = arith.constant 0 : i32
    %c0_i32_1 = arith.constant 0 : i32
    return %c0_i32, %c0_i32_0 : i32, i32
  }
  func.func @transform_6(%arg0: i32) -> (i32, i32) {
    %c0_i32 = arith.constant 0 : i32
    %c0_i32_0 = arith.constant 0 : i32
    return %arg0, %c0_i32 : i32, i32
  }
}

module attributes {stable_mosaic.version = 11 : i64} {
  func.func @_pregathered_kernel(%arg0: i32, %arg1: memref<16x64xbf16, #tpu.memory_space<vmem>>, %arg2: memref<64x128xbf16, #tpu.memory_space<vmem>>, %arg3: memref<1x128xf32, #tpu.memory_space<vmem>>, %arg4: memref<128x3xbf16, #tpu.memory_space<vmem>>, %arg5: memref<16x3xf32, #tpu.memory_space<vmem>>) attributes {dimension_semantics = [#tpu.dimension_semantics<parallel>], iteration_bounds = array<i64: 1>, scalar_prefetch = 0 : i64, scratch_operands = 0 : i64, tpu.core_type = #tpu.core_type<tc>, window_params = [{transform_indices = @transform_0, window_bounds = array<i64: 16, 64>}, {pipeline_mode = #tpu.pipeline_mode<synchronous>, transform_indices = @transform_1, window_bounds = array<i64: 64, 128>}, {pipeline_mode = #tpu.pipeline_mode<synchronous>, transform_indices = @transform_2, window_bounds = array<i64: 1, 128>}, {pipeline_mode = #tpu.pipeline_mode<synchronous>, transform_indices = @transform_3, window_bounds = array<i64: 128, 3>}, {transform_indices = @transform_4, window_bounds = array<i64: 16, 3>}]} {
    %c0 = arith.constant 0 : index
    %c0_0 = arith.constant 0 : index
    %0 = vector.load %arg1[%c0, %c0_0] : memref<16x64xbf16, #tpu.memory_space<vmem>>, vector<16x64xbf16>
    %c0_1 = arith.constant 0 : index
    %c0_2 = arith.constant 0 : index
    %1 = vector.load %arg2[%c0_1, %c0_2] : memref<64x128xbf16, #tpu.memory_space<vmem>>, vector<64x128xbf16>
    %cst = arith.constant dense<0.000000e+00> : vector<16x128xf32>
    %2 = tpu.matmul %0, %1, %cst {dimension_numbers = #tpu.dot_dimension_numbers<[1], [0], [0], [1], [0, 0, 1, 1], [], []>} : vector<16x64xbf16>, vector<64x128xbf16>, vector<16x128xf32> -> vector<16x128xf32>
    %c0_3 = arith.constant 0 : index
    %c0_4 = arith.constant 0 : index
    %3 = vector.load %arg3[%c0_3, %c0_4] : memref<1x128xf32, #tpu.memory_space<vmem>>, vector<1x128xf32>
    %4 = vector.broadcast %3 : vector<1x128xf32> to vector<16x128xf32>
    %5 = arith.addf %2, %4 : vector<16x128xf32>
    %cst_5 = arith.constant 0.000000e+00 : f32
    %6 = vector.broadcast %cst_5 : f32 to vector<16x128xf32>
    %7 = arith.maximumf %5, %6 : vector<16x128xf32>
    %8 = arith.truncf %7 : vector<16x128xf32> to vector<16x128xbf16>
    %c0_6 = arith.constant 0 : index
    %c0_7 = arith.constant 0 : index
    %9 = vector.load %arg4[%c0_6, %c0_7] : memref<128x3xbf16, #tpu.memory_space<vmem>>, vector<128x3xbf16>
    %cst_8 = arith.constant dense<0.000000e+00> : vector<16x3xf32>
    %10 = tpu.matmul %8, %9, %cst_8 {dimension_numbers = #tpu.dot_dimension_numbers<[1], [0], [0], [1], [0, 0, 1, 1], [], []>} : vector<16x128xbf16>, vector<128x3xbf16>, vector<16x3xf32> -> vector<16x3xf32>
    %c0_9 = arith.constant 0 : index
    %c0_10 = arith.constant 0 : index
    %11 = vector.load %arg5[%c0_9, %c0_10] : memref<16x3xf32, #tpu.memory_space<vmem>>, vector<16x3xf32>
    tpu.vector_store %arg5[%c0_9, %c0_10], %10 {strides = array<i32>} : memref<16x3xf32, #tpu.memory_space<vmem>>, vector<16x3xf32>,
    return
  }
  func.func @transform_0(%arg0: i32) -> (i32, i32) {
    %c0_i32 = arith.constant 0 : i32
    %c0_i32_0 = arith.constant 0 : i32
    return %arg0, %c0_i32 : i32, i32
  }
  func.func @transform_1(%arg0: i32) -> (i32, i32) {
    %c0_i32 = arith.constant 0 : i32
    %c0_i32_0 = arith.constant 0 : i32
    %c0_i32_1 = arith.constant 0 : i32
    return %c0_i32, %c0_i32_0 : i32, i32
  }
  func.func @transform_2(%arg0: i32) -> (i32, i32) {
    %c0_i32 = arith.constant 0 : i32
    %c0_i32_0 = arith.constant 0 : i32
    %c0_i32_1 = arith.constant 0 : i32
    return %c0_i32, %c0_i32_0 : i32, i32
  }
  func.func @transform_3(%arg0: i32) -> (i32, i32) {
    %c0_i32 = arith.constant 0 : i32
    %c0_i32_0 = arith.constant 0 : i32
    %c0_i32_1 = arith.constant 0 : i32
    return %c0_i32, %c0_i32_0 : i32, i32
  }
  func.func @transform_4(%arg0: i32) -> (i32, i32) {
    %c0_i32 = arith.constant 0 : i32
    %c0_i32_0 = arith.constant 0 : i32
    return %arg0, %c0_i32 : i32, i32
  }
}

</mosaic_0001>

<bundles_post_ra>
// kernel: tpu_custom_call.1
= control target key start
LH: loop header
LB: loop body
LE: loop exit
PB: predicated region body
PF: predicated region fallthrough
CT: control target
= control target key end

     0   :  { %v300_v0 = vmov 0.0   ;;  %vm301_vm0 = vmmov 0   ;;  %vm64_vm1 = vcmask 523264   ;;  %vm217_vm2 = vcmask 23552   ;;  %s375_s1 = inlined_call_operand.vmem [shape: bf16[64,128], index: 1, kind: input, shape index: {}]   ;;  %s376_s3 = inlined_call_operand.vmem [shape: bf16[128,3], index: 3, kind: input, shape index: {}]   ;;  %s377_s0 = inlined_call_operand.vmem [shape: bf16[16,64], index: 0, kind: input, shape index: {}]   ;;  %s378_s2 = inlined_call_operand.vmem [shape: f32[1,128], index: 2, kind: input, shape index: {}]   ;;  %s379_s4 = inlined_call_operand.vmem [shape: f32[16,3], index: 4, kind: output, shape index: {}]  }
   0x1   :  { %253 = vmatprep.subr.bf16.mxu0 %v300_v0  ;;  %v287_v1 = vld [vmem:[%s375_s1 + $0x18] sm:$0xff]   ;;  %261 = vmatprep.mubr.msk.bf16.mxu0 %vm301_vm0, %v300_v0  ;;  %v288_v2 = vld [vmem:[%s375_s1 + $0x10] sm:$0xff]   ;;  %v289_v4 = vld [vmem:[%s375_s1 + $0x8] sm:$0xff]  }
   0x2   :  { %265 = vmatprep.subr.bf16.mxu1 %v300_v0  ;;  %281 = vmatprep.mubr.msk.bf16.mxu1 %vm301_vm0, %v300_v0  ;;  %v292_v3 = vld [vmem:[%s376_s3 + $0x38] sm:$0xff]   ;;  %v293_v5 = vld [vmem:[%s376_s3 + $0x30] sm:$0xff]   ;;  %v290_v6 = vld [vmem:[%s375_s1] sm:$0xff]  }
   0x3   :  { %254 = vmatpush3.bf16.msra.mxu0 %v287_v1  ;;  %266 = vmatpush3.bf16.msra.mxu1 %v292_v3  ;;  %v294_v7 = vld [vmem:[%s376_s3 + $0x28] sm:$0xff]   ;;  %v291_v8 = vld [vmem:[%s377_s0] sm:$0xff]   ;;  %v296_v10 = vld [vmem:[%s376_s3 + $0x18] sm:$0xff]  }
   0x4   :  { %255 = vmatprep.subr.bf16.mxu0 %v300_v0  ;;  %267 = vmatprep.subr.bf16.mxu1 %v300_v0  ;;  %v295_v9 = vld [vmem:[%s376_s3 + $0x20] sm:$0xff]   ;;  %v297_v11 = vld [vmem:[%s376_s3 + $0x10] sm:$0xff]   ;;  %v298_v12 = vld [vmem:[%s376_s3 + $0x8] sm:$0xff]  }
   0x5   :  { %v299_v13 = vld [vmem:[%s376_s3] sm:$0xff]  }
   0x6   :  { %v224_v14 = vld [vmem:[%s378_s2] ss:$0 sm:$0xff] }
   0x7   :  { %256 = vmatpush3.bf16.msra.mxu0 %v288_v2  ;;  %268 = vmatpush3.bf16.msra.mxu1 %v293_v5 }
   0x8   :  { %257 = vmatprep.subr.bf16.mxu0 %v300_v0  ;;  %269 = vmatprep.subr.bf16.mxu1 %v300_v0 }
   0xb   :  { %258 = vmatpush3.bf16.msra.mxu0 %v289_v4  ;;  %270 = vmatpush3.bf16.msra.mxu1 %v294_v7 }
   0xc   :  { %259 = vmatprep.subr.bf16.mxu0 %v300_v0  ;;  %271 = vmatprep.subr.bf16.mxu1 %v300_v0 }
   0xf   :  { %260 = vmatpush3.bf16.msra.mxu0 %v290_v6  ;;  %272 = vmatpush3.bf16.msra.mxu1 %v295_v9 }
  0x10   :  { %273 = vmatprep.subr.bf16.mxu1 %v300_v0 }
  0x12   :  { %262 = vmatmul.mubr.msk.bf16.vlgmr.msra.gmra.mxu0 %vm64_vm1, %v291_v8 }
  0x13   :  { %274 = vmatpush3.bf16.msra.mxu1 %v296_v10 }
  0x14   :  { %275 = vmatprep.subr.bf16.mxu1 %v300_v0 }
  0x17   :  { %276 = vmatpush3.bf16.msra.mxu1 %v297_v11 }
  0x18   :  { %277 = vmatprep.subr.bf16.mxu1 %v300_v0 }
  0x1b   :  { %278 = vmatpush3.bf16.msra.mxu1 %v298_v12 }
  0x1c   :  { %279 = vmatprep.subr.bf16.mxu1 %v300_v0 }
  0x1f   :  { %280 = vmatpush3.bf16.msra.mxu1 %v299_v13 }
  0xd2   :  { %v102_v15 = vpop.f32.mrf.mxu0 }
  0xd3   :  { %v103_v17 = vadd.f32 %v224_v14, %v102_v15 }
  0xd4   :  { %v263_v16 = vpop.f32.mrf.mxu0 }
  0xd5   :  { %v109_v21 = vmax.f32 %v103_v17, 0.0 }
  0xd6   :  { %v105_v18 = vpop.f32.mrf.mxu0 }
  0xd7   :  { %v106_v19 = vadd.f32 %v224_v14, %v105_v18 }
  0xd8   :  { %v264_v20 = vpop.f32.mrf.mxu0 }
  0xd9   :  { %v110_v22 = vmax.f32 %v106_v19, 0.0 }
  0xdb   :  { %v111_v23 = vpack.c.bf16 %v110_v22, %v109_v21 }
  0xdd   :  { %282 = vmatmul.mubr.bf16.vlgmr.msra.gmra.mxu1 %v111_v23 }
 0x19d   :  { %v210_v24 = vpop.f32.mrf.mxu1 }
 0x19e   :  { %218 = vst.msk [vmem:[%s379_s4] sm:$0xff] %vm217_vm2, %v210_v24 }
 0x19f   :  { %v283_v25 = vpop.f32.mrf.mxu1 }
 0x1a1   :  { %v213_v26 = vpop.f32.mrf.mxu1 }
 0x1a2   :  { %219 = vst.msk [vmem:[%s379_s4 + $0x8] sm:$0xff] %vm217_vm2, %v213_v26 }
 0x1a3   :  { %v284_v27 = vpop.f32.mrf.mxu1 }

</bundles_post_ra>
